<compile_context>
chip_gen: v7x
topology: tpu7x:2x2x1
jax: 0.10.0
libtpu: 0.0.40
codegen_flags: <defaults>
</compile_context>

<pallas_src>
import functools

import jax
import jax.numpy as jnp
from jax.experimental import pallas as pl
from jax.experimental.pallas import tpu as pltpu


def _round_up(x: int, m: int) -> int:
    return (x + m - 1) // m * m


def dnn_kernel(x_ref, w1_ref, b1_ref, w2_ref, b2_ref, w3_ref, b3_ref, o_ref):
    # bf16 operands feed the MXU at full rate; accumulation is fp32.
    # Elementwise (bias add, ReLU) stays fp32; LHS is cast to bf16 right before each dot.
    x = x_ref[...]                                                 # (TB, in) bf16
    h1 = jnp.maximum(
        jnp.dot(x, w1_ref[...], preferred_element_type=jnp.float32) + b1_ref[...],
        0.0)                                                       # (TB, H1p) f32
    h2 = jnp.maximum(
        jnp.dot(h1.astype(jnp.bfloat16), w2_ref[...],
                preferred_element_type=jnp.float32) + b2_ref[...],
        0.0)                                                       # (TB, H2p) f32
    o_ref[...] = (jnp.dot(h2.astype(jnp.bfloat16), w3_ref[...],
                          preferred_element_type=jnp.float32)
                  + b3_ref[...]).astype(o_ref.dtype)               # (TB, Np) f32


def prepare_params(w1, b1, w2, b2, w3, b3):
    """Pad to lane-dense widths and cast weights to bf16 ONCE (hoisted out of forward).

    Zero padding is inert: padded bias entries are 0, ReLU(0 + 0) = 0, so padded lanes
    contribute nothing to subsequent matmuls.
    """
    in_size, H1 = w1.shape
    H2 = w2.shape[1]
    out_size = w3.shape[1]
    H1p = _round_up(H1, 128)        # 200 -> 256
    H2p = _round_up(H2, 128)        # 100 -> 128
    Np = _round_up(out_size, 128)   # 10  -> 128

    w1p = jnp.zeros((in_size, H1p), jnp.bfloat16).at[:, :H1].set(w1.astype(jnp.bfloat16))
    b1p = jnp.zeros((1, H1p), jnp.float32).at[:, :H1].set(b1)
    w2p = jnp.zeros((H1p, H2p), jnp.bfloat16).at[:H1, :H2].set(w2.astype(jnp.bfloat16))
    b2p = jnp.zeros((1, H2p), jnp.float32).at[:, :H2].set(b2)
    w3p = jnp.zeros((H2p, Np), jnp.bfloat16).at[:H2, :out_size].set(w3.astype(jnp.bfloat16))
    b3p = jnp.zeros((1, Np), jnp.float32).at[:, :out_size].set(b3)
    return w1p, b1p, w2p, b2p, w3p, b3p


def _choose_batch_tile(B: int, cap: int = 512) -> int:
    """Batch tile (multiple of 8). Small B -> one tile (launch-latency bound anyway).
    Large B -> even number of grid steps so v7x's two TensorCores are both busy."""
    if B <= 256:
        return _round_up(B, 8)
    steps = max(2, _round_up(pl.cdiv(B, cap), 2))
    return _round_up(pl.cdiv(B, steps), 8)


def dnn_forward(x, w1p, b1p, w2p, b2p, w3p, b3p, *, out_size):
    B, in_size = x.shape
    H1p = w1p.shape[1]
    H2p = w2p.shape[1]
    Np = w3p.shape[1]

    TB = _choose_batch_tile(B)
    grid = (pl.cdiv(B, TB),)

    # Only per-call prep: cast x to bf16 (halves its DMA bytes). No batch padding: the
    # ragged last tile reads unspecified rows whose outputs are never written back.
    xb = x.astype(jnp.bfloat16)

    x_spec = pl.BlockSpec((TB, in_size), lambda i: (i, 0))
    out_spec = pl.BlockSpec((TB, Np), lambda i: (i, 0))
    # Weights / biases are VMEM-resident across all grid steps.
    resident = lambda a: pl.BlockSpec(a.shape, lambda i: (0, 0))

    flops = 2 * B * (in_size * H1p + H1p * H2p + H2p * Np)
    bytes_accessed = (2 * (xb.size + w1p.size + w2p.size + w3p.size)    # bf16 operands
                      + 4 * (b1p.size + b2p.size + b3p.size + B * Np))  # f32 biases + out

    out_padded = pl.pallas_call(
        dnn_kernel,
        out_shape=jax.ShapeDtypeStruct((B, Np), jnp.float32),
        grid=grid,
        in_specs=[x_spec,
                  resident(w1p), resident(b1p),
                  resident(w2p), resident(b2p),
                  resident(w3p), resident(b3p)],
        out_specs=out_spec,
        compiler_params=pltpu.CompilerParams(
            dimension_semantics=("parallel",)),
        cost_estimate=pl.CostEstimate(flops=flops, transcendentals=0,
                                      bytes_accessed=bytes_accessed),
    )(xb, w1p, b1p, w2p, b2p, w3p, b3p)

    return out_padded[:, :out_size]


def init_params(key, input_size, output_size):
    k1, k2, k3, k4, k5 = jax.random.split(key, 5)
    # fc1: kaiming normal (relu) -> std = sqrt(2 / fan_in); bias = 0
    w1 = jax.random.normal(k1, (input_size, 200), jnp.float32) * jnp.sqrt(2.0 / input_size)
    b1 = jnp.zeros((1, 200), jnp.float32)
    # fc2 / fc3: PyTorch Linear default init U(-1/sqrt(fan_in), 1/sqrt(fan_in))
    lim2 = 1.0 / jnp.sqrt(200.0)
    w2 = jax.random.uniform(k2, (200, 100), jnp.float32, -lim2, lim2)
    b2 = jax.random.uniform(k3, (1, 100), jnp.float32, -lim2, lim2)
    lim3 = 1.0 / jnp.sqrt(100.0)
    w3 = jax.random.uniform(k4, (100, output_size), jnp.float32, -lim3, lim3)
    b3 = jax.random.uniform(k5, (1, output_size), jnp.float32, -lim3, lim3)
    return w1, b1, w2, b2, w3, b3


if __name__ == "__main__":
    input_size, output_size, batch = 32, 10, 8
    key = jax.random.PRNGKey(0)
    kx, kp = jax.random.split(key)
    x = jax.random.normal(kx, (batch, input_size), jnp.float32)
    w1, b1, w2, b2, w3, b3 = init_params(kp, input_size, output_size)

    # Pad + cast the parameters ONCE; reuse across every forward call.
    padded = prepare_params(w1, b1, w2, b2, w3, b3)
    padded = tuple(jax.block_until_ready(p) for p in padded)

    # jit fuses the bf16 cast + final slice with the pallas_call into one dispatch.
    fwd = jax.jit(functools.partial(dnn_forward, out_size=output_size))
    out = fwd(x, *padded)
    jax.block_until_ready(out)

    # Reference with the same bf16-operand / fp32-accumulate math (tight check).
    xb = x.astype(jnp.bfloat16)
    h1 = jnp.maximum(jnp.dot(xb, w1.astype(jnp.bfloat16),
                             preferred_element_type=jnp.float32) + b1, 0.0)
    h2 = jnp.maximum(jnp.dot(h1.astype(jnp.bfloat16), w2.astype(jnp.bfloat16),
                             preferred_element_type=jnp.float32) + b2, 0.0)
    ref_bf16 = jnp.dot(h2.astype(jnp.bfloat16), w3.astype(jnp.bfloat16),
                       preferred_element_type=jnp.float32) + b3

    # Full-fp32 PyTorch-style forward (loose check, covers the bf16 quantization error).
    h1f = jnp.maximum(x @ w1 + b1, 0.0)
    h2f = jnp.maximum(h1f @ w2 + b2, 0.0)
    ref_f32 = h2f @ w3 + b3

    assert out.shape == (batch, output_size)
    assert jnp.allclose(out, ref_bf16, atol=1e-3, rtol=1e-3)
    assert jnp.allclose(out, ref_f32, atol=5e-2, rtol=5e-2)

    print("KERNEL_OK")
</pallas_src>

<mosaic_0001>
module attributes {stable_mosaic.version = 11 : i64} {
  func.func @dnn_kernel(%arg0: i32, %arg1: memref<8x32xbf16, #tpu.memory_space<vmem>>, %arg2: memref<32x256xbf16, #tpu.memory_space<vmem>>, %arg3: memref<1x256xf32, #tpu.memory_space<vmem>>, %arg4: memref<256x128xbf16, #tpu.memory_space<vmem>>, %arg5: memref<1x128xf32, #tpu.memory_space<vmem>>, %arg6: memref<128x128xbf16, #tpu.memory_space<vmem>>, %arg7: memref<1x128xf32, #tpu.memory_space<vmem>>, %arg8: memref<8x128xf32, #tpu.memory_space<vmem>>) attributes {dimension_semantics = [#tpu.dimension_semantics<parallel>], iteration_bounds = array<i64: 1>, scalar_prefetch = 0 : i64, scratch_operands = 0 : i64, tpu.core_type = #tpu.core_type<tc>, window_params = [{transform_indices = @transform_0, window_bounds = array<i64: 8, 32>}, {pipeline_mode = #tpu.pipeline_mode<synchronous>, transform_indices = @transform_1, window_bounds = array<i64: 32, 256>}, {pipeline_mode = #tpu.pipeline_mode<synchronous>, transform_indices = @transform_2, window_bounds = array<i64: 1, 256>}, {pipeline_mode = #tpu.pipeline_mode<synchronous>, transform_indices = @transform_3, window_bounds = array<i64: 256, 128>}, {pipeline_mode = #tpu.pipeline_mode<synchronous>, transform_indices = @transform_4, window_bounds = array<i64: 1, 128>}, {pipeline_mode = #tpu.pipeline_mode<synchronous>, transform_indices = @transform_5, window_bounds = array<i64: 128, 128>}, {pipeline_mode = #tpu.pipeline_mode<synchronous>, transform_indices = @transform_6, window_bounds = array<i64: 1, 128>}, {transform_indices = @transform_7, window_bounds = array<i64: 8, 128>}]} {
    %c0 = arith.constant 0 : index
    %c0_0 = arith.constant 0 : index
    %0 = vector.load %arg1[%c0, %c0_0] : memref<8x32xbf16, #tpu.memory_space<vmem>>, vector<8x32xbf16>
    %c0_1 = arith.constant 0 : index
    %c0_2 = arith.constant 0 : index
    %1 = vector.load %arg2[%c0_1, %c0_2] : memref<32x256xbf16, #tpu.memory_space<vmem>>, vector<32x256xbf16>
    %cst = arith.constant dense<0.000000e+00> : vector<8x256xf32>
    %2 = tpu.matmul %0, %1, %cst {dimension_numbers = #tpu.dot_dimension_numbers<[1], [0], [0], [1], [0, 0, 1, 1], [], []>} : vector<8x32xbf16>, vector<32x256xbf16>, vector<8x256xf32> -> vector<8x256xf32>
    %c0_3 = arith.constant 0 : index
    %c0_4 = arith.constant 0 : index
    %3 = vector.load %arg3[%c0_3, %c0_4] : memref<1x256xf32, #tpu.memory_space<vmem>>, vector<1x256xf32>
    %4 = vector.broadcast %3 : vector<1x256xf32> to vector<8x256xf32>
    %5 = arith.addf %2, %4 : vector<8x256xf32>
    %cst_5 = arith.constant 0.000000e+00 : f32
    %6 = vector.broadcast %cst_5 : f32 to vector<8x256xf32>
    %7 = arith.maximumf %5, %6 : vector<8x256xf32>
    %8 = arith.truncf %7 : vector<8x256xf32> to vector<8x256xbf16>
    %c0_6 = arith.constant 0 : index
    %c0_7 = arith.constant 0 : index
    %9 = vector.load %arg4[%c0_6, %c0_7] : memref<256x128xbf16, #tpu.memory_space<vmem>>, vector<256x128xbf16>
    %cst_8 = arith.constant dense<0.000000e+00> : vector<8x128xf32>
    %10 = tpu.matmul %8, %9, %cst_8 {dimension_numbers = #tpu.dot_dimension_numbers<[1], [0], [0], [1], [0, 0, 1, 1], [], []>} : vector<8x256xbf16>, vector<256x128xbf16>, vector<8x128xf32> -> vector<8x128xf32>
    %c0_9 = arith.constant 0 : index
    %c0_10 = arith.constant 0 : index
    %11 = vector.load %arg5[%c0_9, %c0_10] : memref<1x128xf32, #tpu.memory_space<vmem>>, vector<1x128xf32>
    %12 = vector.broadcast %11 : vector<1x128xf32> to vector<8x128xf32>
    %13 = arith.addf %10, %12 : vector<8x128xf32>
    %cst_11 = arith.constant 0.000000e+00 : f32
    %14 = vector.broadcast %cst_11 : f32 to vector<8x128xf32>
    %15 = arith.maximumf %13, %14 : vector<8x128xf32>
    %16 = arith.truncf %15 : vector<8x128xf32> to vector<8x128xbf16>
    %c0_12 = arith.constant 0 : index
    %c0_13 = arith.constant 0 : index
    %17 = vector.load %arg6[%c0_12, %c0_13] : memref<128x128xbf16, #tpu.memory_space<vmem>>, vector<128x128xbf16>
    %cst_14 = arith.constant dense<0.000000e+00> : vector<8x128xf32>
    %18 = tpu.matmul %16, %17, %cst_14 {dimension_numbers = #tpu.dot_dimension_numbers<[1], [0], [0], [1], [0, 0, 1, 1], [], []>} : vector<8x128xbf16>, vector<128x128xbf16>, vector<8x128xf32> -> vector<8x128xf32>
    %c0_15 = arith.constant 0 : index
    %c0_16 = arith.constant 0 : index
    %19 = vector.load %arg7[%c0_15, %c0_16] : memref<1x128xf32, #tpu.memory_space<vmem>>, vector<1x128xf32>
    %20 = vector.broadcast %19 : vector<1x128xf32> to vector<8x128xf32>
    %21 = arith.addf %18, %20 : vector<8x128xf32>
    %c0_17 = arith.constant 0 : index
    %c0_18 = arith.constant 0 : index
    %22 = vector.load %arg8[%c0_17, %c0_18] : memref<8x128xf32, #tpu.memory_space<vmem>>, vector<8x128xf32>
    tpu.vector_store %arg8[%c0_17, %c0_18], %21 {strides = array<i32>} : memref<8x128xf32, #tpu.memory_space<vmem>>, vector<8x128xf32>,
    return
  }
  func.func @transform_0(%arg0: i32) -> (i32, i32) {
    %c0_i32 = arith.constant 0 : i32
    %c0_i32_0 = arith.constant 0 : i32
    return %arg0, %c0_i32 : i32, i32
  }
  func.func @transform_1(%arg0: i32) -> (i32, i32) {
    %c0_i32 = arith.constant 0 : i32
    %c0_i32_0 = arith.constant 0 : i32
    %c0_i32_1 = arith.constant 0 : i32
    return %c0_i32, %c0_i32_0 : i32, i32
  }
  func.func @transform_2(%arg0: i32) -> (i32, i32) {
    %c0_i32 = arith.constant 0 : i32
    %c0_i32_0 = arith.constant 0 : i32
    %c0_i32_1 = arith.constant 0 : i32
    return %c0_i32, %c0_i32_0 : i32, i32
  }
  func.func @transform_3(%arg0: i32) -> (i32, i32) {
    %c0_i32 = arith.constant 0 : i32
    %c0_i32_0 = arith.constant 0 : i32
    %c0_i32_1 = arith.constant 0 : i32
    return %c0_i32, %c0_i32_0 : i32, i32
  }
  func.func @transform_4(%arg0: i32) -> (i32, i32) {
    %c0_i32 = arith.constant 0 : i32
    %c0_i32_0 = arith.constant 0 : i32
    %c0_i32_1 = arith.constant 0 : i32
    return %c0_i32, %c0_i32_0 : i32, i32
  }
  func.func @transform_5(%arg0: i32) -> (i32, i32) {
    %c0_i32 = arith.constant 0 : i32
    %c0_i32_0 = arith.constant 0 : i32
    %c0_i32_1 = arith.constant 0 : i32
    return %c0_i32, %c0_i32_0 : i32, i32
  }
  func.func @transform_6(%arg0: i32) -> (i32, i32) {
    %c0_i32 = arith.constant 0 : i32
    %c0_i32_0 = arith.constant 0 : i32
    %c0_i32_1 = arith.constant 0 : i32
    return %c0_i32, %c0_i32_0 : i32, i32
  }
  func.func @transform_7(%arg0: i32) -> (i32, i32) {
    %c0_i32 = arith.constant 0 : i32
    %c0_i32_0 = arith.constant 0 : i32
    return %arg0, %c0_i32 : i32, i32
  }
}

</mosaic_0001>

<bundles_post_ra>
// kernel: dnn_forward.1
= control target key start
LH: loop header
LB: loop body
LE: loop exit
PB: predicated region body
PF: predicated region fallthrough
CT: control target
= control target key end

     0   :  { %12 = vsyncpa [#allocation3], 0  ;;  %s794_s0 = inlined_call_operand.vmem [shape: bf16[8,32], index: 0, kind: input, shape index: {}]   ;;  %s795_s1 = inlined_call_operand.hbm [shape: bf16[32,256], index: 1, kind: input, shape index: {}]   ;;  %s796_s2 = inlined_call_operand.vmem [shape: f32[1,256], index: 2, kind: input, shape index: {}]   ;;  %s797_s3 = inlined_call_operand.hbm [shape: bf16[256,128], index: 3, kind: input, shape index: {}]   ;;  %s798_s4 = inlined_call_operand.vmem [shape: f32[1,128], index: 4, kind: input, shape index: {}]   ;;  %s799_s5 = inlined_call_operand.hbm [shape: bf16[128,128], index: 5, kind: input, shape index: {}]   ;;  %s800_s6 = inlined_call_operand.vmem [shape: f32[1,128], index: 6, kind: input, shape index: {}]   ;;  %s801_s7 = inlined_call_operand.hbm [shape: f32[8,128], index: 7, kind: output, shape index: {}]  }
   0x1   :  { %13 = vsyncpa [#allocation6], 0 }
   0x2   :  { %14 = vsyncpa [#allocation4], 0  ;;  %s677_s24 = smov [#allocation5]   ;;  %s583_s28 = scalar_lea.hbm %s797_s3, 2048 }
   0x3   :  { %s36_s25 = sshll.u32 %s677_s24, 4  ;;  %p584_p0 = scmp.ne.s32.totalorder %s797_s3, %s583_s28  ;;  %s37_s25 = int_to_ptr.vmem [resolvable:$true] %s36_s25 }
   0x4   :  { %p587_p1 = scmp.lt.u32.totalorder %s583_s28, %s797_s3 }
   0x6   :  { %p589_p2 = pnand %p587_p1, %p584_p0 }
   0x8   :  { %592 = shalt.err (!%p589_p2)
}
   0x9   :  { %s593_s10 = scalar_lea.vmem %s37_s25, 2048  ;;  %p598_p4 = scmp.lt.s32.totalorder %s37_s25, %s37_s25 }
   0xa   :  { %p594_p3 = scmp.ne.s32.totalorder %s37_s25, %s593_s10  ;;  %p599_p5 = scmp.lt.s32.totalorder %s593_s10, %s593_s10 }
   0xc   :  { %p600_p6 = por %p599_p5, %p598_p4 }
   0xe   :  { %p601_p7 = pnand %p600_p6, %p594_p3 }
  0x10   :  { %604 = shalt.err (!%p601_p7)
}
  0x11   :  { %s678_s11 = smov 64   ;;  %s679_s12 = smov 4  }
  0x12   :  { %42 = dma.hbm_to_vmem [thread:$0]  %s797_s3, 2048, %s37_s25, [#allocation6], %s678_s11, %s678_s11, %s679_s12  }
  0x13   :  { %s680_s15 = smov [#allocation2]   ;;  %s605_s19 = scalar_lea.hbm %s795_s1, 512 }
  0x14   :  { %s22_s16 = sshll.u32 %s680_s15, 4  ;;  %p606_p8 = scmp.ne.s32.totalorder %s795_s1, %s605_s19  ;;  %s23_s16 = int_to_ptr.vmem [resolvable:$true] %s22_s16 }
  0x15   :  { %p609_p9 = scmp.lt.u32.totalorder %s605_s19, %s795_s1 }
  0x17   :  { %p611_p10 = pnand %p609_p9, %p606_p8 }
  0x19   :  { %614 = shalt.err (!%p611_p10)
}
  0x1a   :  { %s615_s24 = scalar_lea.vmem %s23_s16, 512  ;;  %p620_p12 = scmp.lt.s32.totalorder %s23_s16, %s23_s16 }
  0x1b   :  { %p616_p11 = scmp.ne.s32.totalorder %s23_s16, %s615_s24  ;;  %p621_p13 = scmp.lt.s32.totalorder %s615_s24, %s615_s24 }
  0x1d   :  { %p622_p0 = por %p621_p13, %p620_p12 }
  0x1f   :  { %p623_p1 = pnand %p622_p0, %p616_p11 }
  0x21   :  { %626 = shalt.err (!%p623_p1)
}
  0x22   :  { %s681_s3 = smov 128   ;;  %s682_s25 = smov 8  }
  0x23   :  { %28 = dma.hbm_to_vmem [thread:$0]  %s795_s1, 512, %s23_s16, [#allocation3], %s681_s3, %s681_s3, %s682_s25  }
  0x24   :  { %s683_s28 = smov [#allocation7]   ;;  %s627_s9 = scalar_lea.hbm %s799_s5, 1024 }
  0x25   :  { %s50_s29 = sshll.u32 %s683_s28, 4  ;;  %p628_p2 = scmp.ne.s32.totalorder %s799_s5, %s627_s9  ;;  %s51_s29 = int_to_ptr.vmem [resolvable:$true] %s50_s29 }
  0x26   :  { %p631_p3 = scmp.lt.u32.totalorder %s627_s9, %s799_s5 }
  0x28   :  { %p633_p4 = pnand %p631_p3, %p628_p2 }
  0x2a   :  { %636 = shalt.err (!%p633_p4)
}
  0x2b   :  { %s637_s17 = scalar_lea.vmem %s51_s29, 1024  ;;  %p642_p6 = scmp.lt.s32.totalorder %s51_s29, %s51_s29 }
  0x2c   :  { %p638_p5 = scmp.ne.s32.totalorder %s51_s29, %s637_s17  ;;  %p643_p7 = scmp.lt.s32.totalorder %s637_s17, %s637_s17 }
  0x2e   :  { %p644_p8 = por %p643_p7, %p642_p6 }
  0x30   :  { %p645_p9 = pnand %p644_p8, %p638_p5 }
  0x32   :  { %648 = shalt.err (!%p645_p9)
}
  0x33   :  { %56 = dma.hbm_to_vmem [thread:$0]  %s799_s5, 1024, %s51_s29, [#allocation6], %s678_s11, %s678_s11, %s679_s12  }
  0x34   :  { %671 = dma.done.wait [#allocation3], 512  }
  0x35   :  { %672 = vsyncadd [#allocation3], 4294966784 }
  0x36   :  { %673 = dma.done.wait [#allocation6], 3072  }
  0x37   :  { %674 = vsyncadd [#allocation6], 4294964224  ;;  %v684_v0 = vmov 0   ;;  %v553_v1 = vld [vmem:[#allocation2 + $0x4] ss:$8 sps:$4 sm:$0xff]   ;;  %vm106_vm0 = vcmask 261120   ;;  %v76_v29 = vlaneseq }
  0x38   :  { %142 = vmatprep.mubr.bf16.mxu0 %v684_v0  ;;  %v555_v2 = vld [vmem:[#allocation2] ss:$8 sps:$4 sm:$0xff]   ;;  %110 = vmatprep.subr.bf16.mxu0 %v553_v1  ;;  %v556_v3 = vld [vmem:[#allocation2 + $0x14] ss:$8 sps:$4 sm:$0xff]   ;;  %v558_v4 = vld [vmem:[#allocation2 + $0x10] ss:$8 sps:$4 sm:$0xff]  }
  0x39   :  { %111 = vmatpush1.bf16.msra.mxu0 %v555_v2  ;;  %v559_v5 = vld [vmem:[#allocation5 + $0x40] sm:$0xff]   ;;  %v69_v7 = vld [vmem:[%s794_s0] sm:$0xf]  ;;  %v561_v8 = vld [vmem:[#allocation5 + $0x48] sm:$0xff]   ;;  %v685_v23 = vmov 0.0   ;;  %v77_v30 = vshrl.u32 %v76_v29, 7 }
  0x3a   :  { %112 = vmatprep.subr.bf16.mxu0 %v556_v3  ;;  %v560_v6 = vld [vmem:[#allocation5] sm:$0xff]   ;;  %491 = vmatprep.subr.bf16.mxu1 %v559_v5  ;;  %v562_v9 = vld [vmem:[#allocation5 + $0x8] sm:$0xff]   ;;  %v563_v10 = vld [vmem:[#allocation5 + $0x50] sm:$0xff]   ;;  %vm686_vm1 = vmmov 0   ;;  %s687_s21 = smov [#allocation8]  }
  0x3b   :  { %492 = vmatpush3.bf16.msra.mxu1 %v560_v6  ;;  %v564_v11 = vld [vmem:[#allocation5 + $0x10] sm:$0xff]   ;;  %v565_v12 = vld [vmem:[#allocation5 + $0x58] sm:$0xff]   ;;  %v567_v14 = vld [vmem:[#allocation5 + $0x60] sm:$0xff]   ;;  %v78_v31 = vsub.s32 0, %v77_v30  ;;  %v82_v33 = vsub.s32 1, %v77_v30  ;;  %s450_s22 = sshll.u32 %s687_s21, 4  ;;  %s451_s22 = int_to_ptr.vmem [resolvable:$true] %s450_s22 }
  0x3c   :  { %493 = vmatprep.subr.bf16.mxu1 %v561_v8  ;;  %v566_v13 = vld [vmem:[#allocation5 + $0x18] sm:$0xff]   ;;  %v568_v15 = vld [vmem:[#allocation5 + $0x20] sm:$0xff]   ;;  %v569_v16 = vld [vmem:[#allocation5 + $0x68] sm:$0xff]   ;;  %p654_p11 = scmp.lt.s32.totalorder %s451_s22, %s451_s22 }
  0x3d   :  { %113 = vmatpush1.bf16.msra.mxu0 %v558_v4  ;;  %v570_v17 = vld [vmem:[#allocation5 + $0x28] sm:$0xff]   ;;  %v571_v18 = vld [vmem:[#allocation5 + $0x70] sm:$0xff]   ;;  %v573_v20 = vld [vmem:[#allocation5 + $0x78] sm:$0xff]  }
  0x3e   :  { %v572_v19 = vld [vmem:[#allocation5 + $0x30] sm:$0xff]   ;;  %v574_v21 = vld [vmem:[#allocation5 + $0x38] sm:$0xff]   ;;  %v575_v22 = vld [vmem:[#allocation7] sm:$0xff]   ;;  %522 = vmatprep.subr.bf16.mxu0 %v685_v23 }
  0x3f   :  { %494 = vmatpush3.bf16.msra.mxu1 %v562_v9  ;;  %v576_v24 = vld [vmem:[#allocation7 + $0x8] sm:$0xff]   ;;  %v577_v25 = vld [vmem:[#allocation7 + $0x10] sm:$0xff]   ;;  %v578_v26 = vld [vmem:[#allocation7 + $0x18] sm:$0xff]  }
  0x40   :  { %464 = vmatmul.mubr.msk.bf16.vlgmr.msra.gmra.mrb[0].mxu0 %vm106_vm0, %v69_v7  ;;  %495 = vmatprep.subr.bf16.mxu1 %v563_v10  ;;  %v579_v27 = vld [vmem:[#allocation7 + $0x20] sm:$0xff]   ;;  %v580_v28 = vld [vmem:[#allocation7 + $0x28] sm:$0xff]   ;;  %v74_v32 = vld [vmem:[%s796_s2] sm:$0x3] }
  0x41   :  { %523 = vmatpush3.bf16.msra.mxu0 %v575_v22  ;;  %v79_v34 = vrot.slane %v74_v32, %v78_v31  ;;  %v83_v35 = vrot.slane %v74_v32, %v82_v33  ;;  %v581_v46 = vld [vmem:[#allocation7 + $0x30] sm:$0xff]   ;;  %v582_v47 = vld [vmem:[#allocation7 + $0x38] sm:$0xff]   ;;  %538 = vmatprep.mubr.msk.bf16.mxu0 %vm686_vm1, %v685_v23 }
  0x42   :  { %524 = vmatprep.subr.bf16.mxu0 %v685_v23  ;;  %v465_v49 = vld [vmem:[%s798_s4] ss:$0 sm:$0xff]  ;;  %s649_s4 = scalar_lea.vmem %s451_s22, 128 }
  0x43   :  { %496 = vmatpush3.bf16.msra.mxu1 %v564_v11  ;;  %v482_v57 = vld [vmem:[%s800_s6] ss:$0 sm:$0xff]  ;;  %p650_p10 = scmp.ne.s32.totalorder %s451_s22, %s649_s4  ;;  %p655_p12 = scmp.lt.s32.totalorder %s649_s4, %s649_s4 }
  0x44   :  { %497 = vmatprep.subr.bf16.mxu1 %v565_v12 }
  0x45   :  { %525 = vmatpush3.bf16.msra.mxu0 %v576_v24  ;;  %p656_p13 = por %p655_p12, %p654_p11 }
  0x46   :  { %526 = vmatprep.subr.bf16.mxu0 %v685_v23 }
  0x47   :  { %498 = vmatpush3.bf16.msra.mxu1 %v566_v13  ;;  %p657_p0 = pnand %p656_p13, %p650_p10 }
  0x48   :  { %499 = vmatprep.subr.bf16.mxu1 %v567_v14 }
  0x49   :  { %527 = vmatpush3.bf16.msra.mxu0 %v577_v25 }
  0x4a   :  { %528 = vmatprep.subr.bf16.mxu0 %v685_v23 }
  0x4b   :  { %500 = vmatpush3.bf16.msra.mxu1 %v568_v15 }
  0x4c   :  { %501 = vmatprep.subr.bf16.mxu1 %v569_v16 }
  0x4d   :  { %529 = vmatpush3.bf16.msra.mxu0 %v578_v26 }
  0x4e   :  { %530 = vmatprep.subr.bf16.mxu0 %v685_v23 }
  0x4f   :  { %502 = vmatpush3.bf16.msra.mxu1 %v570_v17 }
  0x50   :  { %503 = vmatprep.subr.bf16.mxu1 %v571_v18 }
  0x51   :  { %531 = vmatpush3.bf16.msra.mxu0 %v579_v27 }
  0x52   :  { %532 = vmatprep.subr.bf16.mxu0 %v685_v23 }
  0x53   :  { %504 = vmatpush3.bf16.msra.mxu1 %v572_v19 }
  0x54   :  { %505 = vmatprep.subr.bf16.mxu1 %v573_v20 }
  0x55   :  { %533 = vmatpush3.bf16.msra.mxu0 %v580_v28 }
  0x56   :  { %534 = vmatprep.subr.bf16.mxu0 %v685_v23 }
  0x57   :  { %506 = vmatpush3.bf16.msra.mxu1 %v574_v21 }
  0x59   :  { %535 = vmatpush3.bf16.msra.mxu0 %v581_v46 }
  0x5a   :  { %536 = vmatprep.subr.bf16.mxu0 %v685_v23 }
  0x5d   :  { %537 = vmatpush3.bf16.msra.mxu0 %v582_v47 }
 0x113   :  { %v144_v36 = vpop.f32.mrb[0].mxu0 }
 0x114   :  { %v145_v37 = vadd.f32 %v144_v36, %v79_v34  ;;  %v146_v38 = vpop.f32.mrb[1].mxu0 }
 0x115   :  { %v147_v39 = vadd.f32 %v146_v38, %v83_v35  ;;  %v148_v40 = vpop.f32.mrb[2].mxu0 }
 0x116   :  { %v151_v41 = vmax.f32 %v145_v37, 0.0  ;;  %v149_v42 = vpop.f32.mrb[3].mxu0 }
 0x117   :  { %v152_v43 = vmax.f32 %v147_v39, 0.0 }
 0x118   :  { %v153_v45 = vpack.c.bf16 %v151_v41, %v151_v41 }
 0x119   :  { %v154_v44 = vpack.c.bf16 %v152_v43, %v152_v43 }
 0x11b   :  { %322 = vmatprep.mubr.bf16.mxu1 %v154_v44 }
 0x11c   :  { %323 = vmatmul.mubr.bf16.vlgmr.msra.gmra.mrb[0].mxu1 %v153_v45 }
 0x1ef   :  { %v507_v48 = vpop.f32.mrb[0].mxu1 }
 0x1f0   :  { %v508_v50 = vpop.f32.mrb[1].mxu1 }
 0x1f1   :  { %v509_v51 = vadd.f32 %v508_v50, %v507_v48  ;;  %v510_v52 = vpop.f32.mrb[2].mxu1 }
 0x1f2   :  { %v511_v53 = vpop.f32.mrb[3].mxu1 }
 0x1f3   :  { %v325_v54 = vadd.f32 %v509_v51, %v465_v49 }
 0x1f5   :  { %v330_v55 = vmax.f32 %v325_v54, 0.0 }
 0x1f7   :  { %v331_v56 = vpack.c.bf16 %v330_v55, %v330_v55 }
 0x1f9   :  { %539 = vmatmul.mubr.bf16.vlgmr.msra.gmra.mrb[4].mxu0 %v331_v56 }
 0x2cc   :  { %v437_v58 = vpop.f32.mrb[4].mxu0 }
 0x2cd   :  { %v438_v59 = vadd.f32 %v482_v57, %v437_v58  ;;  %v540_v60 = vpop.f32.mrb[5].mxu0 }
 0x2ce   :  { %v440_v61 = vpop.f32.mrb[6].mxu0 }
 0x2cf   :  { %443 = vst [vmem:[#allocation8] sm:$0xff] %v438_v59  ;;  %v541_v62 = vpop.f32.mrb[7].mxu0 }
 0x2d0   :  { %660 = shalt.err (!%p657_p0)
}
 0x2d1   :  { %s661_s6 = scalar_lea.hbm %s801_s7, 128 }
 0x2d2   :  { %p662_p1 = scmp.ne.s32.totalorder %s801_s7, %s661_s6  ;;  %p665_p2 = scmp.lt.u32.totalorder %s661_s6, %s801_s7 }
 0x2d4   :  { %p667_p3 = pnand %p665_p2, %p662_p1 }
 0x2d6   :  { %670 = shalt.err (!%p667_p3)
}
 0x2d7   :  { %453 = dma.vmem_to_hbm [thread:$0]  %s451_s22, 128, %s801_s7, [#allocation4]  }
 0x2d8   :  { %675 = dma.done.wait [#allocation4], 128  }
 0x2d9   :  { %676 = vsyncadd [#allocation4], 4294967168 }
 0x2da   :  { %457 = vsyncpa [#allocation3], 1 }
 0x2db   :  { %458 = vsyncpa [#allocation6], 1 }
 0x2dc   :  { %459 = vsyncpa [#allocation4], 1 }

</bundles_post_ra>
